<compile_context>
chip_gen: v5e
topology: v5e:2x2
jax: 0.10.0
libtpu: 0.0.40
codegen_flags: <defaults>
</compile_context>

<pallas_src>
import functools

import numpy as np
import jax
import jax.numpy as jnp
from jax.experimental import pallas as pl
from jax.experimental.pallas import tpu as pltpu

K_VOL = 27  # 3*3*3 kernel offsets
OFFSETS = np.array(
    [[dz, dy, dx] for dz in (-1, 0, 1) for dy in (-1, 0, 1) for dx in (-1, 0, 1)],
    dtype=np.int32,
)

LANE = 128
_VMEM_LIMIT = 48 * 1024 * 1024  # scoped-VMEM budget; fits v7x (64 MiB physical) with headroom


def _round_up(x, m):
    return (x + m - 1) // m * m


# ------------------------------------------------------------------ Pallas kernel
def _im2col_matmul_kernel(a_ref, b_ref, o_ref, acc_ref):
    """One (tile_n, C_out_p) output tile, reduced over K chunks.

    a_ref  : (tile_n, tk)       mxu_dtype   gathered im2col rows (27*C_in flattened)
    b_ref  : (tk, C_out_p)      mxu_dtype   flattened weights
    o_ref  : (tile_n, C_out_p)  f32         output tile
    acc_ref: (tile_n, C_out_p)  f32         VMEM accumulator (resident across K axis)
    """
    kb = pl.program_id(1)

    @pl.when(kb == 0)
    def _init():
        acc_ref[...] = jnp.zeros_like(acc_ref)

    # Single fused MXU contraction over this K chunk, f32 accumulation.
    acc_ref[...] += jnp.dot(a_ref[...], b_ref[...],
                            preferred_element_type=jnp.float32)

    @pl.when(kb == pl.num_programs(1) - 1)
    def _store():
        o_ref[...] = acc_ref[...].astype(o_ref.dtype)


# ---------------------------------------------------------------------- wrapper
def sparse_conv3d(feat, idx, weight, *, tile_n=256, mxu_dtype=jnp.bfloat16):
    """Sparse 3x3x3 conv:  out[n] = sum_k feat[idx[n, k]] @ weight[k]   (idx = -1 -> skip).

    feat:   (N_in, C_in)      f32
    idx:    (N_out, 27)       int32 kernel map (matching input row per offset, -1 = none)
    weight: (27, C_in, C_out) f32
    """
    n_out, kk = idx.shape
    n_in, c_in = feat.shape
    c_out = weight.shape[2]
    assert kk == K_VOL and weight.shape[0] == K_VOL and weight.shape[1] == c_in

    # ---- im2col gather (plain XLA data movement; TODO(synk): in-kernel prefetch gather)
    safe = jnp.clip(idx, 0, n_in - 1)
    g = jnp.take(feat, safe.reshape(-1), axis=0).reshape(n_out, K_VOL, c_in)
    g = jnp.where((idx >= 0)[:, :, None], g, 0.0)
    a = g.reshape(n_out, K_VOL * c_in)          # (N_out, 27*C_in)
    b = weight.reshape(K_VOL * c_in, c_out)     # (27*C_in, C_out)

    # ---- lane-dense padding + tiling choices ------------------------------------
    k_dim = K_VOL * c_in
    c_out_p = _round_up(c_out, LANE)

    tile_n = max(LANE, _round_up(tile_n, LANE))
    # Keep >=2 output tiles when the point count allows it (feeds both v7x TensorCores);
    # 128 is also the perfect MXU M-fit on v5e.
    while tile_n > LANE and pl.cdiv(n_out, tile_n) < 2:
        tile_n -= LANE
    n_out_p = _round_up(n_out, tile_n)

    # Reduction axis: single block when K is small, 512-wide chunks otherwise.
    k_p = _round_up(k_dim, LANE)
    tk = k_p if k_p <= 1024 else 512
    k_p = _round_up(k_p, tk)

    a_p = jnp.pad(a, ((0, n_out_p - n_out), (0, k_p - k_dim))).astype(mxu_dtype)
    b_p = jnp.pad(b, ((0, k_p - k_dim), (0, c_out_p - c_out))).astype(mxu_dtype)

    out = pl.pallas_call(
        _im2col_matmul_kernel,
        out_shape=jax.ShapeDtypeStruct((n_out_p, c_out_p), jnp.float32),
        grid=(n_out_p // tile_n, k_p // tk),
        in_specs=[
            pl.BlockSpec((tile_n, tk), lambda i, k: (i, k)),
            pl.BlockSpec((tk, c_out_p), lambda i, k: (k, 0)),
        ],
        out_specs=pl.BlockSpec((tile_n, c_out_p), lambda i, k: (i, 0)),
        scratch_shapes=[pltpu.VMEM((tile_n, c_out_p), jnp.float32)],
        compiler_params=pltpu.CompilerParams(
            dimension_semantics=("parallel", "arbitrary"),
            vmem_limit_bytes=_VMEM_LIMIT),
    )(a_p, b_p)
    return out[:n_out, :c_out]


# ----------------------------------------------------------------------------- glue
def build_kernel_map(out_coords, in_coords, tensor_stride):
    """For each (output point, kernel offset) return the matching input index or -1.

    Sort + searchsorted on packed integer keys: O((N_in + 27*N_out) log N_in) memory/work
    instead of the previous dense (N_out, 27, N_in, 3) coordinate compare.
    """
    off = jnp.asarray(OFFSETS, jnp.int32) * jnp.int32(tensor_stride)
    q = (out_coords[:, None, :] + off[None, :, :]).reshape(-1, 3)          # (27*N_out, 3)
    lo = jnp.minimum(jnp.min(in_coords, axis=0), jnp.min(q, axis=0))
    span = (jnp.maximum(jnp.max(in_coords, axis=0), jnp.max(q, axis=0)) - lo
            + 1).astype(jnp.int32)

    def key(c):
        c = (c - lo).astype(jnp.int32)
        return (c[..., 0] * span[1] + c[..., 1]) * span[2] + c[..., 2]

    in_keys = key(in_coords)
    order = jnp.argsort(in_keys)
    sorted_keys = in_keys[order]
    q_keys = key(q)
    pos = jnp.clip(jnp.searchsorted(sorted_keys, q_keys), 0, in_keys.shape[0] - 1)
    hit = sorted_keys[pos] == q_keys
    idx = jnp.where(hit, order[pos], -1).astype(jnp.int32)
    return idx.reshape(out_coords.shape[0], K_VOL)


def sparse_conv3d_ref(feat, idx, weight, *, mxu_dtype=jnp.bfloat16):
    """Pure-JAX reference with the same MXU-operand (bf16) rounding as the Pallas path."""
    safe = jnp.clip(idx, 0, feat.shape[0] - 1)
    g = feat[safe]                                             # (N_out, 27, C_in)
    g = jnp.where((idx >= 0)[..., None], g, 0.0)
    return jnp.einsum("nki,kic->nc", g.astype(mxu_dtype), weight.astype(mxu_dtype),
                      preferred_element_type=jnp.float32)


def simple_pcnet_forward(coords, feats, params, conv_fn):
    w1, w2, w3 = params
    # conv1: kernel 3, stride 1 -> submanifold (output coords == input coords)
    idx1 = build_kernel_map(coords, coords, 1)
    f1 = conv_fn(feats, idx1, w1)
    # conv2: kernel 3, stride 2 -> output coords = unique(coords // 2 * 2),
    # neighbors looked up on the stride-1 input grid.
    # TODO(synk): host-side np.unique forces a device->host sync; fine for coordinate
    # management here, but a device-side sort+dedup would keep the forward fully on TPU.
    coords2 = jnp.asarray(np.unique((np.asarray(coords) // 2) * 2, axis=0), jnp.int32)
    idx2 = build_kernel_map(coords2, coords, 1)
    f2 = conv_fn(f1, idx2, w2)
    # conv3: kernel 3, stride 1 -> submanifold on the coarsened grid (tensor stride 2 offsets)
    idx3 = build_kernel_map(coords2, coords2, 2)
    f3 = conv_fn(f2, idx3, w3)
    return coords2, f3


def init_weight(key, c_in, c_out):
    # deterministic synthetic init (SparseConv3d weight layout: (kernel_volume, C_in, C_out), no bias)
    return jax.random.normal(key, (K_VOL, c_in, c_out), jnp.float32) / np.sqrt(c_in * K_VOL)


# ----------------------------------------------------------------------------- main
if __name__ == "__main__":
    key = jax.random.PRNGKey(0)
    k_coord, k_feat, k_w1, k_w2, k_w3 = jax.random.split(key, 5)

    # 200 unique voxel coordinates inside a 12^3 grid, 4 input channels.
    n_pts, g = 200, 12
    cells = jax.random.choice(k_coord, g * g * g, shape=(n_pts,), replace=False)
    coords = jnp.stack([cells // (g * g), (cells // g) % g, cells % g], axis=-1).astype(jnp.int32)
    feats = jax.random.normal(k_feat, (n_pts, 4), jnp.float32)

    params = (
        init_weight(k_w1, 4, 32),    # conv1
        init_weight(k_w2, 32, 32),   # conv2 (stride 2)
        init_weight(k_w3, 32, 2),    # conv3
    )

    conv_pallas = functools.partial(sparse_conv3d, tile_n=256, mxu_dtype=jnp.bfloat16)
    out_coords, out_feats = simple_pcnet_forward(coords, feats, params, conv_pallas)
    out_feats = jax.block_until_ready(out_feats)

    # correctness check: pure-JAX reference of the same sparse-conv semantics with
    # matched bf16 operand rounding (gather/masking itself is exact).
    conv_ref = functools.partial(sparse_conv3d_ref, mxu_dtype=jnp.bfloat16)
    _, ref_feats = simple_pcnet_forward(coords, feats, params, conv_ref)
    np.testing.assert_allclose(np.asarray(out_feats), np.asarray(ref_feats),
                               rtol=1e-2, atol=5e-3)

    print("KERNEL_OK")
</pallas_src>

<mosaic_0001>
module attributes {stable_mosaic.version = 11 : i64} {
  func.func @_im2col_matmul_kernel(%arg0: i32, %arg1: i32, %arg2: memref<128x128xbf16, #tpu.memory_space<vmem>>, %arg3: memref<128x128xbf16, #tpu.memory_space<vmem>>, %arg4: memref<128x128xf32, #tpu.memory_space<vmem>>, %arg5: memref<128x128xf32, #tpu.memory_space<vmem>>) attributes {dimension_semantics = [#tpu.dimension_semantics<parallel>, #tpu.dimension_semantics<arbitrary>], iteration_bounds = array<i64: 2, 1>, scalar_prefetch = 0 : i64, scratch_operands = 1 : i64, tpu.core_type = #tpu.core_type<tc>, window_params = [{transform_indices = @transform_0, window_bounds = array<i64: 128, 128>}, {transform_indices = @transform_1, window_bounds = array<i64: 128, 128>}, {transform_indices = @transform_2, window_bounds = array<i64: 128, 128>}]} {
    %c0_i32 = arith.constant 0 : i32
    %0 = arith.cmpi eq, %arg1, %c0_i32 : i32
    %1 = arith.extui %0 : i1 to i32
    %c0_i32_0 = arith.constant 0 : i32
    %2 = arith.cmpi ne, %1, %c0_i32_0 : i32
    scf.if %2 {
      %cst_10 = arith.constant 0.000000e+00 : f32
      %12 = vector.broadcast %cst_10 : f32 to vector<128x128xf32>
      %c0_11 = arith.constant 0 : index
      %c0_12 = arith.constant 0 : index
      %13 = vector.load %arg5[%c0_11, %c0_12] : memref<128x128xf32, #tpu.memory_space<vmem>>, vector<128x128xf32>
      tpu.vector_store %arg5[%c0_11, %c0_12], %12 {strides = array<i32>} : memref<128x128xf32, #tpu.memory_space<vmem>>, vector<128x128xf32>,
    } else {
    }
    %c0 = arith.constant 0 : index
    %c0_1 = arith.constant 0 : index
    %3 = vector.load %arg5[%c0, %c0_1] : memref<128x128xf32, #tpu.memory_space<vmem>>, vector<128x128xf32>
    %c0_2 = arith.constant 0 : index
    %c0_3 = arith.constant 0 : index
    %4 = vector.load %arg2[%c0_2, %c0_3] : memref<128x128xbf16, #tpu.memory_space<vmem>>, vector<128x128xbf16>
    %c0_4 = arith.constant 0 : index
    %c0_5 = arith.constant 0 : index
    %5 = vector.load %arg3[%c0_4, %c0_5] : memref<128x128xbf16, #tpu.memory_space<vmem>>, vector<128x128xbf16>
    %cst = arith.constant dense<0.000000e+00> : vector<128x128xf32>
    %6 = tpu.matmul %4, %5, %cst {dimension_numbers = #tpu.dot_dimension_numbers<[1], [0], [0], [1], [0, 0, 1, 1], [], []>} : vector<128x128xbf16>, vector<128x128xbf16>, vector<128x128xf32> -> vector<128x128xf32>
    %7 = arith.addf %3, %6 : vector<128x128xf32>
    %c0_6 = arith.constant 0 : index
    %c0_7 = arith.constant 0 : index
    %8 = vector.load %arg5[%c0_6, %c0_7] : memref<128x128xf32, #tpu.memory_space<vmem>>, vector<128x128xf32>
    tpu.vector_store %arg5[%c0_6, %c0_7], %7 {strides = array<i32>} : memref<128x128xf32, #tpu.memory_space<vmem>>, vector<128x128xf32>,
    %c0_i32_8 = arith.constant 0 : i32
    %9 = arith.cmpi eq, %arg1, %c0_i32_8 : i32
    %10 = arith.extui %9 : i1 to i32
    %c0_i32_9 = arith.constant 0 : i32
    %11 = arith.cmpi ne, %10, %c0_i32_9 : i32
    scf.if %11 {
      %c0_10 = arith.constant 0 : index
      %c0_11 = arith.constant 0 : index
      %12 = vector.load %arg5[%c0_10, %c0_11] : memref<128x128xf32, #tpu.memory_space<vmem>>, vector<128x128xf32>
      %c0_12 = arith.constant 0 : index
      %c0_13 = arith.constant 0 : index
      %13 = vector.load %arg4[%c0_12, %c0_13] : memref<128x128xf32, #tpu.memory_space<vmem>>, vector<128x128xf32>
      tpu.vector_store %arg4[%c0_12, %c0_13], %12 {strides = array<i32>} : memref<128x128xf32, #tpu.memory_space<vmem>>, vector<128x128xf32>,
    } else {
    }
    return
  }
  func.func @transform_0(%arg0: i32, %arg1: i32) -> (i32, i32) {
    %c0_i32 = arith.constant 0 : i32
    return %arg0, %arg1 : i32, i32
  }
  func.func @transform_1(%arg0: i32, %arg1: i32) -> (i32, i32) {
    %c0_i32 = arith.constant 0 : i32
    %c0_i32_0 = arith.constant 0 : i32
    return %arg1, %c0_i32 : i32, i32
  }
  func.func @transform_2(%arg0: i32, %arg1: i32) -> (i32, i32) {
    %c0_i32 = arith.constant 0 : i32
    %c0_i32_0 = arith.constant 0 : i32
    return %arg0, %c0_i32 : i32, i32
  }
}

</mosaic_0001>

<bundles_post_ra>
// kernel: tpu_custom_call.1
= control target key start
LH: loop header
LB: loop body
LE: loop exit
PB: predicated region body
PF: predicated region fallthrough
CT: control target
= control target key end

     0   :  { %7 = vsyncpa [#allocation4], 0  ;;  %s1151_s0 = inlined_call_operand.hbm [shape: bf16[256,128], index: 0, kind: input, shape index: {}]   ;;  %s1152_s1 = inlined_call_operand.hbm [shape: bf16[128,128], index: 1, kind: input, shape index: {}]   ;;  %s1153_s2 = inlined_call_operand.hbm [shape: f32[256,128], index: 2, kind: output, shape index: {}]  }
   0x1   :  { %9 = vsyncpa [#allocation4 + $0x1], 0 }
   0x2   :  { %10 = vsyncpa [#allocation7], 0 }
   0x3   :  { %11 = vsyncpa [#allocation5], 0 }
   0x4   :  { %13 = vsyncpa [#allocation5 + $0x1], 0  ;;  %s966_s9 = smov 0   ;;  %s968_s10 = smov 0  }
   0x5   :  { %s970_s11 = smov 0   ;;  %s972_s12 = smov 0  }
   0x6   :  { %s974_s13 = smov 0   ;;  %s976_s14 = smov 0  }
   0x7 LB: > { %s598_s15 = sadd.s32 4294967295, %s944_s14   ;;  %s599_s16 = sadd.s32 4294967294, %s944_s14   ;;  %s944_s14 = sphi %s976_s14, %s19_s14   ;;  %s940_s13 = sphi %s974_s13, %s1165_s13   ;;  %s936_s12 = sphi %s972_s12, %s1164_s12   ;;  %s932_s11 = sphi %s970_s11, %s1163_s11   ;;  %s928_s10 = sphi %s968_s10, %s1162_s10   ;;  %s924_s9 = sphi %s966_s9, %s1161_s9  }
   0x8   : > { %p53_p0 = scmp.ne.s32.totalorder %s928_s10, %s924_s9  ;;  %p1000_p1 = scmp.eq.s32.totalorder %s598_s15, 0 }
   0x9   : > { %p1004_p2 = scmp.eq.s32.totalorder %s598_s15, 1  ;;  %p109_p3 = scmp.eq.s32.totalorder %s599_s16, 1 }
   0xa   : > { %p1010_p4 = por %p1000_p1, %p53_p0  ;;  %p600_p5 = scmp.ge.s32.totalorder %s944_s14, 1 }
   0xb   : > { %p1015_p6 = por %p109_p3, %p53_p0  ;;  %p116_p7 = scmp.lt.s32.totalorder %s944_s14, 3 }
   0xc   : > { %s130_s23 = sshll.u32 %s1152_s1, 4  ;;  %s946_s25 = smov [#allocation6]   ;;  %s131_s23 = int_to_ptr.hbm [resolvable:$true] %s130_s23 }
   0xd   : > { %p1023_p8 = pnand %p600_p5, %p116_p7  ;;  %s132_s26 = sshll.u32 %s946_s25, 4  ;;  %s133_s26 = int_to_ptr.vmem [resolvable:$true] %s132_s26 }
   0xe   : > { %p602_p11 = scmp.ge.s32.totalorder %s944_s14, 2  ;;  %s947_s27 = smov 64  }
   0xf   : > { %p729_p9 = pneg %p1023_p8  ;;  %s948_s28 = smov 4  }
  0x10   : > { %s31_s29 = sadd.s32 1, %s940_s13  ;;  %s40_s30 = sadd.s32 1, %s932_s11 }
  0x11   : > { %p730_p10 = pnand %p729_p9, %p1000_p1  ;;  %p33_p12 = scmp.ge.s32.totalorder %s31_s29, 2 }
  0x12   : > { %p47_p13 = scmp.ne.s32.totalorder %s932_s11, %s928_s10  ;;  %p48_p0 = scmp.eq.s32.totalorder %s944_s14, 0 }
  0x13   : > { %732 = dma.hbm_to_vmem [thread:$0]  (!%p730_p10), %s131_s23, 1024, %s133_s26, [#allocation7], %s947_s27, %s947_s27, %s948_s28  }
  0x14   : > { %s1167_s29 = smov (%p33_p12, %s31_s29), 0  ;;  %p1042_p3 = por %p48_p0, %p47_p13 }
  0x15   : > { %p1048_p5 = por %p1004_p2, %p47_p13  ;;  %s35_s5 = ssub.s32 %s940_s13, %s1167_s29 }
  0x16   : > { %p742_p7 = scmp.lt.s32.totalorder %s944_s14, 2  ;;  %p38_p9 = scmp.eq.s32.totalorder %s35_s5, 0 }
  0x17   : > { %s146_s6 = sand.u32 1, %s932_s11   ;;  %s679_s15 = sshll.u32 %s940_s13, 6 }
  0x18   : > { %s603_s7 = sshll.u32 %s146_s6, 6  ;;  %s156_s22 = scalar_lea.hbm %s1151_s0, %s679_s15 }
  0x19   : > { %s1057_s8 = scalar_select %p38_p9, %s932_s11, %s40_s30  }
  0x1a   : > { %s150_s23 = scalar_lea.vmem [#allocation3], %s603_s7  ;;  %s157_s18 = sshll.u32 %s156_s22, 4  ;;  %s158_s18 = int_to_ptr.hbm [resolvable:$true] %s157_s18 }
  0x1b   : > { %s159_s25 = sshll.u32 %s150_s23, 4  ;;  %p734_p2 = pnand %p742_p7, %p1042_p3  ;;  %s160_s25 = int_to_ptr.vmem [resolvable:$true] %s159_s25 }
  0x1c   : > { %s147_s26 = scalar_lea.sflag [#allocation4], %s146_s6  ;;  %171 = sbr.rel (%p1023_p8) target bundleno = 230 (0xe6), region = 28 }
  0x1d   : > { %736 = dma.hbm_to_vmem [thread:$0]  (!%p734_p2), %s158_s18, 1024, %s160_s25, %s147_s26, %s947_s27, %s947_s27, %s948_s28  }
  0x1e   : > { %s1071_s30 = sand.u32 (!%p1023_p8), 1, %s928_s10  }
  0x1f   : > { %s607_s5 = sshll.u32 (!%p1023_p8), %s1071_s30, 6  ;;  %s174_s7 = scalar_lea.sflag (!%p1023_p8), [#allocation4], %s1071_s30 }
  0x20   : > { %s1075_s15 = scalar_lea.vmem (!%p1023_p8), [#allocation3], %s607_s5 }
  0x21   : > { %911 = dma.done.wait (%p1010_p4), %s174_s7, 1024  }
  0x22   : > { %913 = vsyncadd (%p1010_p4), %s174_s7, 4294966272 }
  0x23   : > { %915 = dma.done.wait (%p1000_p1), [#allocation7], 1024  }
  0x24   : > { %917 = vsyncadd (%p1000_p1), [#allocation7], 4294966272  ;;  %v695_v0 = vld [vmem:[#allocation6 + $0x38] sm:$0xff]  ;;  %v694_v1 = vld [vmem:[#allocation6 + $0x30] sm:$0xff]  ;;  %s609_s17 = sshll.u32 %s1071_s30, 7  ;;  %s696_s24 = sshll.u32 %s936_s12, 7 }
  0x25   : > { %371 = vmatpush.bf16.msra.mxu0 %v695_v0  ;;  %697 = vmatpush.bf16.msra.mxu1 %v695_v0  ;;  %v693_v2 = vld [vmem:[#allocation6 + $0x28] sm:$0xff]  ;;  %v692_v3 = vld [vmem:[#allocation6 + $0x20] sm:$0xff]  ;;  %v691_v4 = vld [vmem:[#allocation6 + $0x18] sm:$0xff]  ;;  %s1094_s19 = scalar_lea.vmem [#allocation8], %s609_s17  ;;  %s499_s3 = scalar_lea.hbm %s1153_s2, %s696_s24 }
  0x26   : > { %698 = vmatpush.bf16.msra.mxu2 %v695_v0  ;;  %699 = vmatpush.bf16.msra.mxu3 %v695_v0  ;;  %v690_v5 = vld [vmem:[#allocation6 + $0x10] sm:$0xff]  ;;  %v689_v6 = vld [vmem:[#allocation6 + $0x8] sm:$0xff]  ;;  %v688_v7 = vld [vmem:[#allocation6] sm:$0xff]  ;;  %s500_s6 = sshll.u32 %s1094_s19, 4  ;;  %s502_s16 = sshll.u32 %s499_s3, 4  ;;  %s501_s6 = int_to_ptr.vmem [resolvable:$true] %s500_s6  ;;  %s503_s16 = int_to_ptr.hbm [resolvable:$true] %s502_s16 }
  0x27   : > { %v680_v8 = vld [vmem:[%s1075_s15] sm:$0xff]  ;;  %v682_v9 = vld [vmem:[%s1075_s15 + $0x10] sm:$0xff]  ;;  %v681_v12 = vld [vmem:[%s1075_s15 + $0x8] sm:$0xff]  ;;  %s488_s12 = scalar_lea.sflag [#allocation5], %s1071_s30  ;;  %s872_s21 = sshra.s32 %s503_s16, 4  ;;  %s873_s21 = int_to_ptr.hbm [resolvable:$true] %s872_s21 }
  0x28   : > { %v684_v10 = vld [vmem:[%s1075_s15 + $0x20] sm:$0xff]  ;;  %v686_v11 = vld [vmem:[%s1075_s15 + $0x30] sm:$0xff]  ;;  %v683_v13 = vld [vmem:[%s1075_s15 + $0x18] sm:$0xff]  ;;  %s874_s22 = scalar_lea.hbm %s873_s21, 128  ;;  %s878_s18 = scalar_lea.hbm %s1153_s2, 256 }
  0x29   : > { %372 = vmatpush.bf16.msra.mxu0 %v694_v1  ;;  %700 = vmatpush.bf16.msra.mxu1 %v694_v1  ;;  %v685_v14 = vld [vmem:[%s1075_s15 + $0x28] sm:$0xff]  ;;  %v687_v15 = vld [vmem:[%s1075_s15 + $0x38] sm:$0xff]  ;;  %p875_p1 = scmp.ne.s32.totalorder %s873_s21, %s874_s22  ;;  %p879_p10 = scmp.lt.s32.totalorder %s873_s21, %s1153_s2 }
  0x2a   : > { %701 = vmatpush.bf16.msra.mxu2 %v694_v1  ;;  %702 = vmatpush.bf16.msra.mxu3 %v694_v1  ;;  %p880_p12 = scmp.lt.s32.totalorder %s878_s18, %s874_s22 }
  0x2b   : > { %p876_p4 = pnand %p875_p1, %p1048_p5 }
  0x2c   : > { %p881_p13 = por %p880_p12, %p879_p10 }
  0x2d   : > { %373 = vmatpush.bf16.msra.mxu0 %v693_v2  ;;  %703 = vmatpush.bf16.msra.mxu1 %v693_v2  ;;  %p877_p8 = pneg %p876_p4 }
  0x2e   : > { %704 = vmatpush.bf16.msra.mxu2 %v693_v2  ;;  %705 = vmatpush.bf16.msra.mxu3 %v693_v2 }
  0x2f   : > { %p882_p0 = pnand %p881_p13, %p877_p8 }
  0x31   : > { %374 = vmatpush.bf16.msra.mxu0 %v692_v3  ;;  %706 = vmatpush.bf16.msra.mxu1 %v692_v3 }
  0x32   : > { %707 = vmatpush.bf16.msra.mxu2 %v692_v3  ;;  %708 = vmatpush.bf16.msra.mxu3 %v692_v3 }
  0x35   : > { %375 = vmatpush.bf16.msra.mxu0 %v691_v4  ;;  %709 = vmatpush.bf16.msra.mxu1 %v691_v4 }
  0x36   : > { %710 = vmatpush.bf16.msra.mxu2 %v691_v4  ;;  %711 = vmatpush.bf16.msra.mxu3 %v691_v4 }
  0x39   : > { %376 = vmatpush.bf16.msra.mxu0 %v690_v5  ;;  %712 = vmatpush.bf16.msra.mxu1 %v690_v5 }
  0x3a   : > { %713 = vmatpush.bf16.msra.mxu2 %v690_v5  ;;  %714 = vmatpush.bf16.msra.mxu3 %v690_v5 }
  0x3d   : > { %377 = vmatpush.bf16.msra.mxu0 %v689_v6  ;;  %715 = vmatpush.bf16.msra.mxu1 %v689_v6 }
  0x3e   : > { %716 = vmatpush.bf16.msra.mxu2 %v689_v6  ;;  %717 = vmatpush.bf16.msra.mxu3 %v689_v6 }
  0x41   : > { %378 = vmatpush.bf16.msra.mxu0 %v688_v7  ;;  %718 = vmatpush.bf16.msra.mxu1 %v688_v7 }
  0x42   : > { %719 = vmatpush.bf16.msra.mxu2 %v688_v7  ;;  %720 = vmatpush.bf16.msra.mxu3 %v688_v7 }
  0x44   : > { %379 = vmatmul.bf16.vlgmr.msra.gmra.mxu0 %v680_v8  ;;  %389 = vmatmul.bf16.vlgmr.msra.gmra.mxu1 %v682_v9 }
  0x45   : > { %399 = vmatmul.bf16.vlgmr.msra.gmra.mxu2 %v684_v10  ;;  %409 = vmatmul.bf16.vlgmr.msra.gmra.mxu3 %v686_v11 }
  0x54   : > { %384 = vmatmul.bf16.gmra.mxu0 %v681_v12  ;;  %394 = vmatmul.bf16.gmra.mxu1 %v683_v13 }
  0x55   : > { %404 = vmatmul.bf16.gmra.mxu2 %v685_v14  ;;  %414 = vmatmul.bf16.gmra.mxu3 %v687_v15 }
  0xc1   : > { %v380_v16 = vpop.f32.mrf.mxu0  ;;  %v390_v17 = vpop.f32.mrf.mxu1 }
  0xc2   : > { %471 = vst [vmem:[%s1094_s19] sm:$0xff] %v380_v16 }
  0xc3   : > { %475 = vst [vmem:[%s1094_s19 + $0x20] sm:$0xff] %v390_v17 }
  0xc8   : > { %v400_v18 = vpop.f32.mrf.mxu2  ;;  %v410_v19 = vpop.f32.mrf.mxu3 }
  0xc9   : > { %479 = vst [vmem:[%s1094_s19 + $0x40] sm:$0xff] %v400_v18  ;;  %v382_v20 = vpop.f32.mrf.mxu0  ;;  %v392_v21 = vpop.f32.mrf.mxu1 }
  0xca   : > { %483 = vst [vmem:[%s1094_s19 + $0x60] sm:$0xff] %v410_v19 }
  0xcb   : > { %472 = vst [vmem:[%s1094_s19 + $0x8] sm:$0xff] %v382_v20 }
  0xcc   : > { %476 = vst [vmem:[%s1094_s19 + $0x28] sm:$0xff] %v392_v21 }
  0xd0   : > { %v402_v22 = vpop.f32.mrf.mxu2  ;;  %v412_v23 = vpop.f32.mrf.mxu3 }
  0xd1   : > { %480 = vst [vmem:[%s1094_s19 + $0x48] sm:$0xff] %v402_v22  ;;  %v385_v24 = vpop.f32.mrf.mxu0  ;;  %v395_v25 = vpop.f32.mrf.mxu1 }
  0xd2   : > { %484 = vst [vmem:[%s1094_s19 + $0x68] sm:$0xff] %v412_v23 }
  0xd3   : > { %473 = vst [vmem:[%s1094_s19 + $0x10] sm:$0xff] %v385_v24 }
  0xd4   : > { %477 = vst [vmem:[%s1094_s19 + $0x30] sm:$0xff] %v395_v25 }
  0xd8   : > { %v405_v26 = vpop.f32.mrf.mxu2  ;;  %v415_v27 = vpop.f32.mrf.mxu3 }
  0xd9   : > { %481 = vst [vmem:[%s1094_s19 + $0x50] sm:$0xff] %v405_v26  ;;  %v387_v28 = vpop.f32.mrf.mxu0  ;;  %v397_v29 = vpop.f32.mrf.mxu1 }
  0xda   : > { %485 = vst [vmem:[%s1094_s19 + $0x70] sm:$0xff] %v415_v27 }
  0xdb   : > { %474 = vst [vmem:[%s1094_s19 + $0x18] sm:$0xff] %v387_v28 }
  0xdc   : > { %478 = vst [vmem:[%s1094_s19 + $0x38] sm:$0xff] %v397_v29 }
  0xe0   : > { %v407_v30 = vpop.f32.mrf.mxu2  ;;  %v417_v31 = vpop.f32.mrf.mxu3 }
  0xe1   : > { %482 = vst [vmem:[%s1094_s19 + $0x58] sm:$0xff] %v407_v30 }
  0xe2   : > { %486 = vst [vmem:[%s1094_s19 + $0x78] sm:$0xff] %v417_v31 }
  0xe3   : > { %885 = shalt.err (!%p882_p0)
}
  0xe4   : > { %s949_s30 = smov 128   ;;  %s950_s7 = smov 8  }
  0xe5   : > { %727 = dma.vmem_to_hbm [thread:$0]  (%p1048_p5), %s501_s6, 2048, %s503_s16, %s488_s12, %s949_s30, %s949_s30, %s950_s7  }
  0xe6 PF: > { %s517_s15 = sand.u32 1, %s924_s9   ;;  %p738_p3 = pnand %p602_p11, %p1015_p6 }
  0xe7   : > { %s518_s17 = scalar_lea.sflag [#allocation5], %s517_s15 }
  0xe8   : > { %p739_p7 = pneg %p738_p3 }
  0xea   : > { %919 = dma.done.wait (%p739_p7), %s518_s17, 2048  }
  0xeb   : > { %921 = vsyncadd (%p739_p7), %s518_s17, 4294965248  ;;  %s19_s14 = sadd.s32 1, %s944_s14   ;;  %s1161_s9 = smov %s928_s10 }
  0xec   : > { %p16_p9 = scmp.ge.s32.totalorder %s19_s14, 4   ;;  %s1162_s10 = smov %s932_s11 }
  0xed   : > { %s1163_s11 = smov %s1057_s8  ;;  %s1164_s12 = smov %s940_s13 }
  0xee   : > { %s1165_s13 = smov %s1167_s29  ;;  %18 = sbr.rel (!%p16_p9) target bundleno = 7 (0x7), region = 86 }
  0xf3   :  { %524 = vsyncpa [#allocation4], 1 }
  0xf4   :  { %526 = vsyncpa [#allocation4 + $0x1], 1 }
  0xf5   :  { %527 = vsyncpa [#allocation7], 1 }
  0xf6   :  { %528 = vsyncpa [#allocation5], 1 }
  0xf7   :  { %530 = vsyncpa [#allocation5 + $0x1], 1 }

</bundles_post_ra>
